<compile_context>
chip_gen: v6e
topology: v6e:2x2x1
jax: 0.10.0
libtpu: 0.0.40
codegen_flags: <defaults>
</compile_context>

<pallas_src>
import math
from functools import partial

import jax
import jax.numpy as jnp
import numpy as np
from jax.experimental import pallas as pl
from jax.experimental.pallas import tpu as pltpu


def attention_temporal_kernel(x_ref, wqkv_ref, wp4_ref, wp8_ref, wp16_ref,
                              bp4_ref, bp8_ref, bp16_ref, out_ref, *, num_heads):
    BKb, C, T = x_ref.shape
    H = num_heads
    hd = C // H
    t1 = T // 4
    t2 = T // 2
    M = BKb * T

    # x arrives in the module's native (BKb, C, T) layout: transpose + cast in
    # VMEM (no extra HBM transpose pass in the wrapper).
    xt = jnp.transpose(x_ref[...], (0, 2, 1))                       # (BKb, T, C) f32
    x2d = xt.reshape(M, C).astype(jnp.bfloat16)

    # Fused QKV projection for all 3 scales.  The attention scale is already
    # folded into the q columns of wqkv, so no per-score multiply is needed.
    qkv = jnp.dot(x2d, wqkv_ref[...],
                  preferred_element_type=jnp.float32)               # (M, 9C) f32

    key_idx = jax.lax.broadcasted_iota(jnp.int32, (T, T), 1)        # key/time index
    t_idx = jax.lax.broadcasted_iota(jnp.int32, (M, C), 0) % T      # query/time index

    def heads_to_batch(a2d):
        # (M, C) f32 -> (H*BKb, T, hd) bf16 with g = h*BKb + b.
        parts = [a2d[:, h * hd:(h + 1) * hd].reshape(BKb, T, hd) for h in range(H)]
        g = jnp.concatenate(parts, axis=0) if H > 1 else parts[0]
        return g.astype(jnp.bfloat16)

    def heads_to_rows(o):
        # (H*BKb, T, hd) f32 -> (M, C) f32  (inverse of heads_to_batch).
        cols = [o[h * BKb:(h + 1) * BKb].reshape(M, hd) for h in range(H)]
        return jnp.concatenate(cols, axis=-1) if H > 1 else cols[0]

    def scale_attn(si, window_start):
        # Windowed MHA over full-T rows; keys with t < window_start are masked
        # out of the softmax.  Query rows with t < window_start produce finite
        # values that the downstream blend masks never select.
        base = si * 3 * C
        q = heads_to_batch(qkv[:, base:base + C])
        k = heads_to_batch(qkv[:, base + C:base + 2 * C])
        v = heads_to_batch(qkv[:, base + 2 * C:base + 3 * C])
        s = jnp.einsum('gtd,gud->gtu', q, k,
                       preferred_element_type=jnp.float32)          # (g, T, T) f32
        if window_start > 0:
            s = jnp.where(key_idx >= window_start, s, -1e30)
        m = jnp.max(s, axis=-1, keepdims=True)
        p = jnp.exp(s - m)
        denom = jnp.sum(p, axis=-1, keepdims=True)                  # >= 1 always
        o = jnp.einsum('gtu,gud->gtd', p.astype(jnp.bfloat16), v,
                       preferred_element_type=jnp.float32)          # (g, T, hd) f32
        # Post-PV normalization: divide the (T, hd) output, not the (T, T) probs.
        o = o * pl.reciprocal(denom, approx=True)
        return heads_to_rows(o)

    def proj(y2d, w_ref, b_ref):
        y = jnp.dot(y2d.astype(jnp.bfloat16), w_ref[...],
                    preferred_element_type=jnp.float32)
        return y + b_ref[...]

    # TODO(synk): for large, tile-aligned T, slice the 4-/8-scale branches to
    # their tail t1/t2 rows (and run proj_4 on t1 rows only) instead of masked
    # full-T attention; the masked path is kept for generality / small T.
    o4 = scale_attn(0, T - t1)                    # valid rows: t >= T - t1
    x4p = proj(o4, wp4_ref, bp4_ref)

    o8 = scale_attn(1, t2)                        # valid rows: t >= t2
    x8 = jnp.where(t_idx >= (T - t1), 0.5 * o8 + 0.5 * x4p, o8)
    x8p = proj(x8, wp8_ref, bp8_ref)

    o16 = scale_attn(2, 0)                        # all rows valid
    x16 = jnp.where(t_idx >= t2, 0.5 * o16 + 0.5 * x8p, o16)

    # attn_drop / proj_drop are identity; single contiguous bf16 slab store.
    out_ref[...] = proj(x16, wp16_ref, bp16_ref).astype(out_ref.dtype)


def _per_elem_vmem_bytes(T, C, H):
    """Approximate per-batch-element VMEM live set for one grid step."""
    x_in = 2 * C * T * 4          # f32 input block, double buffered
    out_blk = 2 * T * C * 2       # bf16 output block, double buffered
    qkv = T * 9 * C * 4           # fused QKV activations (f32)
    chain = 3 * T * C * 4         # o/x4p/x8p blend-chain tensors (f32)
    qkv_bf16 = 3 * T * C * 2      # batched bf16 q/k/v of the live scale
    scores = 2 * H * T * T * 4    # s and p of the live scale (f32)
    return int(1.5 * (x_in + out_blk + qkv + chain + qkv_bf16 + scores))


def _pick_bk_blk(BK, T, C, H, budget_bytes):
    per_elem = max(1, _per_elem_vmem_bytes(T, C, H))
    feasible = []
    for d in range(1, BK + 1):
        if BK % d:
            continue
        if (BK // d) > 1 and (d * T) % 8 != 0:
            continue                      # out-block sublane constraint when tiled
        if d * per_elem > budget_bytes:
            continue
        feasible.append(d)
    if not feasible:
        feasible = [1] if (T % 8 == 0 or BK == 1) else [BK]
    target_steps = min(4, BK)             # >=2 steps per TensorCore on dual-TC parts
    pipelined = [d for d in feasible if BK // d >= target_steps] or feasible
    aligned = [d for d in pipelined if (d * T) % 256 == 0] or pipelined
    return max(aligned)


def attention_temporal(x_nct, params, num_heads=2):
    """x_nct: (BK, C, T) float32 — the layout the PyTorch module consumes.

    Returns (BK, T, C) bfloat16, numerically matching the module's forward
    (eval mode) to bf16 precision.
    """
    BK, C, T = x_nct.shape
    assert T % 4 == 0, "Attention_Temporal requires T divisible by 4"
    assert C % num_heads == 0
    head_dim = C // num_heads
    scale = head_dim ** (-0.5)

    # Pre-transpose weights once; fold the attention scale into the q columns.
    def prep_qkv(w):                       # w: (3C, C) torch layout -> (C, 3C)
        wt = w.T
        return jnp.concatenate([wt[:, :C] * scale, wt[:, C:]], axis=1)

    wqkv = jnp.concatenate(
        [prep_qkv(params["wqkv4"]), prep_qkv(params["wqkv8"]),
         prep_qkv(params["wqkv16"])], axis=1).astype(jnp.bfloat16)   # (C, 9C)
    wp4 = params["wp4"].T.astype(jnp.bfloat16)
    wp8 = params["wp8"].T.astype(jnp.bfloat16)
    wp16 = params["wp16"].T.astype(jnp.bfloat16)
    bp4 = params["bp4"].astype(jnp.float32).reshape(1, C)
    bp8 = params["bp8"].astype(jnp.float32).reshape(1, C)
    bp16 = params["bp16"].astype(jnp.float32).reshape(1, C)

    # ---- VMEM-budgeted blocking (v7x: 64 MiB/TC, v5e/v6e: 128 MiB) ----
    try:
        info = pltpu.get_tpu_info()
        vmem_phys = int(getattr(info, "vmem_capacity_bytes", 64 * 1024 * 1024))
    except Exception:
        vmem_phys = 64 * 1024 * 1024      # assume the smallest (v7x) if unknown
    vmem_limit = max(min(vmem_phys * 3 // 4, 96 * 1024 * 1024), 32 * 1024 * 1024)
    # Grid-resident weights are (conservatively) double-buffered by the pipeline.
    weight_bytes = 2 * ((9 * C * C + 3 * C * C) * 2 + 3 * C * 4)
    budget = max(vmem_limit - weight_bytes - (4 << 20), 1)

    bk_blk = _pick_bk_blk(BK, T, C, num_heads, budget)
    grid0 = BK // bk_blk

    kernel = partial(attention_temporal_kernel, num_heads=num_heads)

    out2d = pl.pallas_call(
        kernel,
        out_shape=jax.ShapeDtypeStruct((BK * T, C), jnp.bfloat16),
        grid=(grid0,),
        in_specs=[
            pl.BlockSpec((bk_blk, C, T), lambda b: (b, 0, 0)),      # x (native layout)
            pl.BlockSpec((C, 9 * C), lambda b: (0, 0)),             # fused QKV weight
            pl.BlockSpec((C, C), lambda b: (0, 0)),                 # proj_4 weight
            pl.BlockSpec((C, C), lambda b: (0, 0)),                 # proj_8 weight
            pl.BlockSpec((C, C), lambda b: (0, 0)),                 # proj_16 weight
            pl.BlockSpec((1, C), lambda b: (0, 0)),                 # proj_4 bias
            pl.BlockSpec((1, C), lambda b: (0, 0)),                 # proj_8 bias
            pl.BlockSpec((1, C), lambda b: (0, 0)),                 # proj_16 bias
        ],
        out_specs=pl.BlockSpec((bk_blk * T, C), lambda b: (b, 0)),
        compiler_params=pltpu.CompilerParams(
            dimension_semantics=("parallel",),
            vmem_limit_bytes=int(vmem_limit)),
    )(x_nct.astype(jnp.float32), wqkv, wp4, wp8, wp16, bp4, bp8, bp16)
    return out2d.reshape(BK, T, C)


def reference_forward(x_nct, params, num_heads):
    """Pure-JAX (f32) transcription of the PyTorch forward (correctness check)."""
    x = jnp.transpose(x_nct, (0, 2, 1)).astype(jnp.float32)     # (BK, T, C)
    BK, T, C = x.shape
    hd = C // num_heads
    scale = hd ** (-0.5)
    t1, t2 = T // 4, T // 2

    def attn(x_s, w):
        t = x_s.shape[1]
        qkv = jnp.einsum('btc,dc->btd', x_s, w)                 # (BK, t, 3C)
        qkv = qkv.reshape(BK, t, 3, num_heads, hd)
        qkv = jnp.transpose(qkv, (2, 0, 3, 1, 4))               # (3, BK, H, t, hd)
        q, k, v = qkv[0], qkv[1], qkv[2]
        a = jnp.einsum('bhtd,bhsd->bhts', q, k) * scale
        a = jax.nn.softmax(a, axis=-1)
        o = jnp.einsum('bhts,bhsd->bhtd', a, v)
        return jnp.transpose(o, (0, 2, 1, 3)).reshape(BK, t, C)

    x4 = attn(x[:, T - t1:], params["wqkv4"])
    x8 = attn(x[:, t2:], params["wqkv8"])
    x16 = attn(x, params["wqkv16"])

    x4 = jnp.einsum('btc,dc->btd', x4, params["wp4"]) + params["bp4"][0]
    m = min(x8.shape[1] - t1, x4.shape[1])
    x8 = x8.at[:, t1:t1 + m].set(0.5 * x8[:, t1:t1 + m] + 0.5 * x4[:, :m])
    x8 = jnp.einsum('btc,dc->btd', x8, params["wp8"]) + params["bp8"][0]
    x16 = x16.at[:, t2:].set(0.5 * x16[:, t2:] + 0.5 * x8)
    x16 = jnp.einsum('btc,dc->btd', x16, params["wp16"]) + params["bp16"][0]
    return x16


if __name__ == "__main__":
    # Small shapes consistent with the module: dim=32, num_heads=2, T=16, B=2, K=2.
    B, K = 2, 2
    BK = B * K
    dim = 32
    T = 16
    num_heads = 2

    key = jax.random.PRNGKey(0)
    keys = jax.random.split(key, 10)

    def w(k, shape, fan_in):
        bound = 1.0 / math.sqrt(fan_in)
        return jax.random.uniform(k, shape, jnp.float32, -bound, bound)

    params = {
        "wqkv4":  w(keys[0], (3 * dim, dim), dim),
        "wqkv8":  w(keys[1], (3 * dim, dim), dim),
        "wqkv16": w(keys[2], (3 * dim, dim), dim),
        "wp4":  w(keys[3], (dim, dim), dim),
        "bp4":  w(keys[4], (1, dim), dim),
        "wp8":  w(keys[5], (dim, dim), dim),
        "bp8":  w(keys[6], (1, dim), dim),
        "wp16": w(keys[7], (dim, dim), dim),
        "bp16": w(keys[8], (1, dim), dim),
    }

    # Input in the PyTorch layout (BK, C, T).
    x_nct = jax.random.normal(keys[9], (BK, dim, T), jnp.float32)

    out = attention_temporal(x_nct, params, num_heads=num_heads)
    out = jax.block_until_ready(out)

    ref = reference_forward(x_nct, params, num_heads=num_heads)
    ref = jax.block_until_ready(ref)

    assert out.shape == (BK, T, dim)
    # bf16 matmul operands + bf16 output + approx reciprocal => ~1% numerics.
    out_f32 = np.asarray(out.astype(jnp.float32))
    np.testing.assert_allclose(out_f32, np.asarray(ref), rtol=3e-2, atol=3e-2)

    print("KERNEL_OK")
</pallas_src>

<mosaic_0001>
module attributes {stable_mosaic.version = 11 : i64} {
  func.func @attention_temporal_kernel(%arg0: i32, %arg1: memref<1x32x16xf32, #tpu.memory_space<vmem>>, %arg2: memref<32x288xbf16, #tpu.memory_space<vmem>>, %arg3: memref<32x32xbf16, #tpu.memory_space<vmem>>, %arg4: memref<32x32xbf16, #tpu.memory_space<vmem>>, %arg5: memref<32x32xbf16, #tpu.memory_space<vmem>>, %arg6: memref<1x32xf32, #tpu.memory_space<vmem>>, %arg7: memref<1x32xf32, #tpu.memory_space<vmem>>, %arg8: memref<1x32xf32, #tpu.memory_space<vmem>>, %arg9: memref<16x32xbf16, #tpu.memory_space<vmem>>) attributes {dimension_semantics = [#tpu.dimension_semantics<parallel>], iteration_bounds = array<i64: 4>, scalar_prefetch = 0 : i64, scratch_operands = 0 : i64, tpu.core_type = #tpu.core_type<tc>, window_params = [{transform_indices = @transform_0, window_bounds = array<i64: 1, 32, 16>}, {pipeline_mode = #tpu.pipeline_mode<synchronous>, transform_indices = @transform_1, window_bounds = array<i64: 32, 288>}, {pipeline_mode = #tpu.pipeline_mode<synchronous>, transform_indices = @transform_2, window_bounds = array<i64: 32, 32>}, {pipeline_mode = #tpu.pipeline_mode<synchronous>, transform_indices = @transform_3, window_bounds = array<i64: 32, 32>}, {pipeline_mode = #tpu.pipeline_mode<synchronous>, transform_indices = @transform_4, window_bounds = array<i64: 32, 32>}, {pipeline_mode = #tpu.pipeline_mode<synchronous>, transform_indices = @transform_5, window_bounds = array<i64: 1, 32>}, {pipeline_mode = #tpu.pipeline_mode<synchronous>, transform_indices = @transform_6, window_bounds = array<i64: 1, 32>}, {pipeline_mode = #tpu.pipeline_mode<synchronous>, transform_indices = @transform_7, window_bounds = array<i64: 1, 32>}, {transform_indices = @transform_8, window_bounds = array<i64: 16, 32>}]} {
    %c0 = arith.constant 0 : index
    %c0_0 = arith.constant 0 : index
    %c0_1 = arith.constant 0 : index
    %0 = vector.load %arg1[%c0, %c0_0, %c0_1] : memref<1x32x16xf32, #tpu.memory_space<vmem>>, vector<1x32x16xf32>
    %1 = tpu.transpose %0, [0, 2, 1] : vector<1x32x16xf32> -> vector<1x16x32xf32>
    %2 = vector.shape_cast %1 : vector<1x16x32xf32> to vector<16x32xf32>
    %3 = arith.truncf %2 : vector<16x32xf32> to vector<16x32xbf16>
    %c0_2 = arith.constant 0 : index
    %c0_3 = arith.constant 0 : index
    %4 = vector.load %arg2[%c0_2, %c0_3] : memref<32x288xbf16, #tpu.memory_space<vmem>>, vector<32x288xbf16>
    %cst = arith.constant dense<0.000000e+00> : vector<16x288xf32>
    %5 = tpu.matmul %3, %4, %cst {dimension_numbers = #tpu.dot_dimension_numbers<[1], [0], [0], [1], [0, 0, 1, 1], [], []>} : vector<16x32xbf16>, vector<32x288xbf16>, vector<16x288xf32> -> vector<16x288xf32>
    %6 = tpu.iota {dimensions = array<i32: 1>} : vector<16x16xi32>
    %7 = tpu.iota {dimensions = array<i32: 0>} : vector<16x32xi32>
    %c16_i32 = arith.constant 16 : i32
    %c0_i32 = arith.constant 0 : i32
    %8 = arith.cmpi eq, %c16_i32, %c0_i32 : i32
    %c1_i32 = arith.constant 1 : i32
    %9 = arith.select %8, %c1_i32, %c16_i32 : i32
    %10 = vector.broadcast %9 : i32 to vector<16x32xi32>
    %11 = arith.remsi %7, %10 : vector<16x32xi32>
    %c0_i32_4 = arith.constant 0 : i32
    %12 = vector.broadcast %c0_i32_4 : i32 to vector<16x32xi32>
    %13 = arith.cmpi ne, %11, %12 : vector<16x32xi32>
    %c0_i32_5 = arith.constant 0 : i32
    %14 = vector.broadcast %c0_i32_5 : i32 to vector<16x32xi32>
    %15 = arith.cmpi slt, %11, %14 : vector<16x32xi32>
    %c0_i32_6 = arith.constant 0 : i32
    %16 = arith.cmpi slt, %9, %c0_i32_6 : i32
    %17 = vector.broadcast %16 : i1 to vector<16x32xi1>
    %18 = vector.broadcast %17 : vector<16x32xi1> to vector<16x32xi1>
    %19 = arith.xori %15, %18 : vector<16x32xi1>
    %20 = arith.andi %19, %13 : vector<16x32xi1>
    %21 = vector.broadcast %9 : i32 to vector<16x32xi32>
    %22 = arith.addi %11, %21 : vector<16x32xi32>
    %23 = arith.select %20, %22, %11 : vector<16x32xi1>, vector<16x32xi32>
    %24 = vector.extract_strided_slice %5 {offsets = [0, 0], sizes = [16, 32], strides = [1, 1]} : vector<16x288xf32> to vector<16x32xf32>
    %25 = vector.extract_strided_slice %24 {offsets = [0, 0], sizes = [16, 16], strides = [1, 1]} : vector<16x32xf32> to vector<16x16xf32>
    %26 = vector.shape_cast %25 : vector<16x16xf32> to vector<1x16x16xf32>
    %27 = vector.extract_strided_slice %24 {offsets = [0, 16], sizes = [16, 16], strides = [1, 1]} : vector<16x32xf32> to vector<16x16xf32>
    %28 = vector.shape_cast %27 : vector<16x16xf32> to vector<1x16x16xf32>
    %29 = tpu.concatenate %26, %28 in 0 : vector<1x16x16xf32>, vector<1x16x16xf32> -> vector<2x16x16xf32>
    %30 = arith.truncf %29 : vector<2x16x16xf32> to vector<2x16x16xbf16>
    %31 = vector.extract_strided_slice %5 {offsets = [0, 32], sizes = [16, 32], strides = [1, 1]} : vector<16x288xf32> to vector<16x32xf32>
    %32 = vector.extract_strided_slice %31 {offsets = [0, 0], sizes = [16, 16], strides = [1, 1]} : vector<16x32xf32> to vector<16x16xf32>
    %33 = vector.shape_cast %32 : vector<16x16xf32> to vector<1x16x16xf32>
    %34 = vector.extract_strided_slice %31 {offsets = [0, 16], sizes = [16, 16], strides = [1, 1]} : vector<16x32xf32> to vector<16x16xf32>
    %35 = vector.shape_cast %34 : vector<16x16xf32> to vector<1x16x16xf32>
    %36 = tpu.concatenate %33, %35 in 0 : vector<1x16x16xf32>, vector<1x16x16xf32> -> vector<2x16x16xf32>
    %37 = arith.truncf %36 : vector<2x16x16xf32> to vector<2x16x16xbf16>
    %38 = vector.extract_strided_slice %5 {offsets = [0, 64], sizes = [16, 32], strides = [1, 1]} : vector<16x288xf32> to vector<16x32xf32>
    %39 = vector.extract_strided_slice %38 {offsets = [0, 0], sizes = [16, 16], strides = [1, 1]} : vector<16x32xf32> to vector<16x16xf32>
    %40 = vector.shape_cast %39 : vector<16x16xf32> to vector<1x16x16xf32>
    %41 = vector.extract_strided_slice %38 {offsets = [0, 16], sizes = [16, 16], strides = [1, 1]} : vector<16x32xf32> to vector<16x16xf32>
    %42 = vector.shape_cast %41 : vector<16x16xf32> to vector<1x16x16xf32>
    %43 = tpu.concatenate %40, %42 in 0 : vector<1x16x16xf32>, vector<1x16x16xf32> -> vector<2x16x16xf32>
    %44 = arith.truncf %43 : vector<2x16x16xf32> to vector<2x16x16xbf16>
    "tpu.trace_start"() <{level = 10 : i32, message = "gtd,gud->gtu"}> : () -> ()
    %cst_7 = arith.constant dense<0.000000e+00> : vector<2x16x16xf32>
    %45 = tpu.matmul %30, %37, %cst_7 {dimension_numbers = #tpu.dot_dimension_numbers<[2], [2], [1], [1], [0, 0, 0, 1, 1, 1], [0], [0]>} : vector<2x16x16xbf16>, vector<2x16x16xbf16>, vector<2x16x16xf32> -> vector<2x16x16xf32>
    %c12_i32 = arith.constant 12 : i32
    "tpu.trace_stop"() : () -> ()
    %46 = vector.broadcast %c12_i32 : i32 to vector<16x16xi32>
    %47 = arith.cmpi sge, %6, %46 : vector<16x16xi32>
    %cst_8 = arith.constant -1.000000e+30 : f32
    %48 = vector.shape_cast %47 : vector<16x16xi1> to vector<1x16x16xi1>
    %49 = vector.broadcast %48 : vector<1x16x16xi1> to vector<2x16x16xi1>
    %50 = vector.broadcast %cst_8 : f32 to vector<2x16x16xf32>
    %51 = arith.select %49, %45, %50 : vector<2x16x16xi1>, vector<2x16x16xf32>
    %cst_9 = arith.constant dense<0xFF800000> : vector<2x16xf32>
    %52 = vector.multi_reduction <maximumf>, %51, %cst_9 [2] : vector<2x16x16xf32> to vector<2x16xf32>
    %53 = vector.shape_cast %52 : vector<2x16xf32> to vector<2x16x1xf32>
    %54 = vector.broadcast %53 : vector<2x16x1xf32> to vector<2x16x16xf32>
    %55 = arith.subf %51, %54 : vector<2x16x16xf32>
    %56 = math.exp %55 : vector<2x16x16xf32>
    %cst_10 = arith.constant dense<0.000000e+00> : vector<2x16xf32>
    %57 = vector.multi_reduction <add>, %56, %cst_10 [2] : vector<2x16x16xf32> to vector<2x16xf32>
    %58 = vector.shape_cast %57 : vector<2x16xf32> to vector<2x16x1xf32>
    %59 = arith.truncf %56 : vector<2x16x16xf32> to vector<2x16x16xbf16>
    "tpu.trace_start"() <{level = 10 : i32, message = "gtu,gud->gtd"}> : () -> ()
    %cst_11 = arith.constant dense<0.000000e+00> : vector<2x16x16xf32>
    %60 = tpu.matmul %59, %44, %cst_11 {dimension_numbers = #tpu.dot_dimension_numbers<[2], [1], [1], [2], [0, 0, 0, 1, 1, 2], [0], [0]>} : vector<2x16x16xbf16>, vector<2x16x16xbf16>, vector<2x16x16xf32> -> vector<2x16x16xf32>
    "tpu.trace_stop"() : () -> ()
    %61 = tpu.reciprocal %58 {approx = true} : vector<2x16x1xf32> -> vector<2x16x1xf32>
    %62 = vector.broadcast %61 : vector<2x16x1xf32> to vector<2x16x16xf32>
    %63 = arith.mulf %60, %62 : vector<2x16x16xf32>
    %64 = vector.extract_strided_slice %63 {offsets = [0, 0, 0], sizes = [1, 16, 16], strides = [1, 1, 1]} : vector<2x16x16xf32> to vector<1x16x16xf32>
    %65 = vector.shape_cast %64 : vector<1x16x16xf32> to vector<16x16xf32>
    %66 = vector.extract_strided_slice %63 {offsets = [1, 0, 0], sizes = [1, 16, 16], strides = [1, 1, 1]} : vector<2x16x16xf32> to vector<1x16x16xf32>
    %67 = vector.shape_cast %66 : vector<1x16x16xf32> to vector<16x16xf32>
    %68 = tpu.concatenate %65, %67 in 1 : vector<16x16xf32>, vector<16x16xf32> -> vector<16x32xf32>
    %69 = arith.truncf %68 : vector<16x32xf32> to vector<16x32xbf16>
    %c0_12 = arith.constant 0 : index
    %c0_13 = arith.constant 0 : index
    %70 = vector.load %arg3[%c0_12, %c0_13] : memref<32x32xbf16, #tpu.memory_space<vmem>>, vector<32x32xbf16>
    %cst_14 = arith.constant dense<0.000000e+00> : vector<16x32xf32>
    %71 = tpu.matmul %69, %70, %cst_14 {dimension_numbers = #tpu.dot_dimension_numbers<[1], [0], [0], [1], [0, 0, 1, 1], [], []>} : vector<16x32xbf16>, vector<32x32xbf16>, vector<16x32xf32> -> vector<16x32xf32>
    %c0_15 = arith.constant 0 : index
    %c0_16 = arith.constant 0 : index
    %72 = vector.load %arg6[%c0_15, %c0_16] : memref<1x32xf32, #tpu.memory_space<vmem>>, vector<1x32xf32>
    %73 = vector.broadcast %72 : vector<1x32xf32> to vector<16x32xf32>
    %74 = arith.addf %71, %73 : vector<16x32xf32>
    %75 = vector.extract_strided_slice %5 {offsets = [0, 96], sizes = [16, 32], strides = [1, 1]} : vector<16x288xf32> to vector<16x32xf32>
    %76 = vector.extract_strided_slice %75 {offsets = [0, 0], sizes = [16, 16], strides = [1, 1]} : vector<16x32xf32> to vector<16x16xf32>
    %77 = vector.shape_cast %76 : vector<16x16xf32> to vector<1x16x16xf32>
    %78 = vector.extract_strided_slice %75 {offsets = [0, 16], sizes = [16, 16], strides = [1, 1]} : vector<16x32xf32> to vector<16x16xf32>
    %79 = vector.shape_cast %78 : vector<16x16xf32> to vector<1x16x16xf32>
    %80 = tpu.concatenate %77, %79 in 0 : vector<1x16x16xf32>, vector<1x16x16xf32> -> vector<2x16x16xf32>
    %81 = arith.truncf %80 : vector<2x16x16xf32> to vector<2x16x16xbf16>
    %82 = vector.extract_strided_slice %5 {offsets = [0, 128], sizes = [16, 32], strides = [1, 1]} : vector<16x288xf32> to vector<16x32xf32>
    %83 = vector.extract_strided_slice %82 {offsets = [0, 0], sizes = [16, 16], strides = [1, 1]} : vector<16x32xf32> to vector<16x16xf32>
    %84 = vector.shape_cast %83 : vector<16x16xf32> to vector<1x16x16xf32>
    %85 = vector.extract_strided_slice %82 {offsets = [0, 16], sizes = [16, 16], strides = [1, 1]} : vector<16x32xf32> to vector<16x16xf32>
    %86 = vector.shape_cast %85 : vector<16x16xf32> to vector<1x16x16xf32>
    %87 = tpu.concatenate %84, %86 in 0 : vector<1x16x16xf32>, vector<1x16x16xf32> -> vector<2x16x16xf32>
    %88 = arith.truncf %87 : vector<2x16x16xf32> to vector<2x16x16xbf16>
    %89 = vector.extract_strided_slice %5 {offsets = [0, 160], sizes = [16, 32], strides = [1, 1]} : vector<16x288xf32> to vector<16x32xf32>
    %90 = vector.extract_strided_slice %89 {offsets = [0, 0], sizes = [16, 16], strides = [1, 1]} : vector<16x32xf32> to vector<16x16xf32>
    %91 = vector.shape_cast %90 : vector<16x16xf32> to vector<1x16x16xf32>
    %92 = vector.extract_strided_slice %89 {offsets = [0, 16], sizes = [16, 16], strides = [1, 1]} : vector<16x32xf32> to vector<16x16xf32>
    %93 = vector.shape_cast %92 : vector<16x16xf32> to vector<1x16x16xf32>
    %94 = tpu.concatenate %91, %93 in 0 : vector<1x16x16xf32>, vector<1x16x16xf32> -> vector<2x16x16xf32>
    %95 = arith.truncf %94 : vector<2x16x16xf32> to vector<2x16x16xbf16>
    "tpu.trace_start"() <{level = 10 : i32, message = "gtd,gud->gtu"}> : () -> ()
    %cst_17 = arith.constant dense<0.000000e+00> : vector<2x16x16xf32>
    %96 = tpu.matmul %81, %88, %cst_17 {dimension_numbers = #tpu.dot_dimension_numbers<[2], [2], [1], [1], [0, 0, 0, 1, 1, 1], [0], [0]>} : vector<2x16x16xbf16>, vector<2x16x16xbf16>, vector<2x16x16xf32> -> vector<2x16x16xf32>
    %c8_i32 = arith.constant 8 : i32
    "tpu.trace_stop"() : () -> ()
    %97 = vector.broadcast %c8_i32 : i32 to vector<16x16xi32>
    %98 = arith.cmpi sge, %6, %97 : vector<16x16xi32>
    %cst_18 = arith.constant -1.000000e+30 : f32
    %99 = vector.shape_cast %98 : vector<16x16xi1> to vector<1x16x16xi1>
    %100 = vector.broadcast %99 : vector<1x16x16xi1> to vector<2x16x16xi1>
    %101 = vector.broadcast %cst_18 : f32 to vector<2x16x16xf32>
    %102 = arith.select %100, %96, %101 : vector<2x16x16xi1>, vector<2x16x16xf32>
    %cst_19 = arith.constant dense<0xFF800000> : vector<2x16xf32>
    %103 = vector.multi_reduction <maximumf>, %102, %cst_19 [2] : vector<2x16x16xf32> to vector<2x16xf32>
    %104 = vector.shape_cast %103 : vector<2x16xf32> to vector<2x16x1xf32>
    %105 = vector.broadcast %104 : vector<2x16x1xf32> to vector<2x16x16xf32>
    %106 = arith.subf %102, %105 : vector<2x16x16xf32>
    %107 = math.exp %106 : vector<2x16x16xf32>
    %cst_20 = arith.constant dense<0.000000e+00> : vector<2x16xf32>
    %108 = vector.multi_reduction <add>, %107, %cst_20 [2] : vector<2x16x16xf32> to vector<2x16xf32>
    %109 = vector.shape_cast %108 : vector<2x16xf32> to vector<2x16x1xf32>
    %110 = arith.truncf %107 : vector<2x16x16xf32> to vector<2x16x16xbf16>
    "tpu.trace_start"() <{level = 10 : i32, message = "gtu,gud->gtd"}> : () -> ()
    %cst_21 = arith.constant dense<0.000000e+00> : vector<2x16x16xf32>
    %111 = tpu.matmul %110, %95, %cst_21 {dimension_numbers = #tpu.dot_dimension_numbers<[2], [1], [1], [2], [0, 0, 0, 1, 1, 2], [0], [0]>} : vector<2x16x16xbf16>, vector<2x16x16xbf16>, vector<2x16x16xf32> -> vector<2x16x16xf32>
    "tpu.trace_stop"() : () -> ()
    %112 = tpu.reciprocal %109 {approx = true} : vector<2x16x1xf32> -> vector<2x16x1xf32>
    %113 = vector.broadcast %112 : vector<2x16x1xf32> to vector<2x16x16xf32>
    %114 = arith.mulf %111, %113 : vector<2x16x16xf32>
    %115 = vector.extract_strided_slice %114 {offsets = [0, 0, 0], sizes = [1, 16, 16], strides = [1, 1, 1]} : vector<2x16x16xf32> to vector<1x16x16xf32>
    %116 = vector.shape_cast %115 : vector<1x16x16xf32> to vector<16x16xf32>
    %117 = vector.extract_strided_slice %114 {offsets = [1, 0, 0], sizes = [1, 16, 16], strides = [1, 1, 1]} : vector<2x16x16xf32> to vector<1x16x16xf32>
    %118 = vector.shape_cast %117 : vector<1x16x16xf32> to vector<16x16xf32>
    %119 = tpu.concatenate %116, %118 in 1 : vector<16x16xf32>, vector<16x16xf32> -> vector<16x32xf32>
    %c12_i32_22 = arith.constant 12 : i32
    %120 = vector.broadcast %c12_i32_22 : i32 to vector<16x32xi32>
    %121 = arith.cmpi sge, %23, %120 : vector<16x32xi32>
    %cst_23 = arith.constant 5.000000e-01 : f32
    %122 = vector.broadcast %cst_23 : f32 to vector<16x32xf32>
    %123 = arith.mulf %122, %119 : vector<16x32xf32>
    %cst_24 = arith.constant 5.000000e-01 : f32
    %124 = vector.broadcast %cst_24 : f32 to vector<16x32xf32>
    %125 = arith.mulf %124, %74 : vector<16x32xf32>
    %126 = arith.addf %123, %125 : vector<16x32xf32>
    %127 = arith.select %121, %126, %119 : vector<16x32xi1>, vector<16x32xf32>
    %128 = arith.truncf %127 : vector<16x32xf32> to vector<16x32xbf16>
    %c0_25 = arith.constant 0 : index
    %c0_26 = arith.constant 0 : index
    %129 = vector.load %arg4[%c0_25, %c0_26] : memref<32x32xbf16, #tpu.memory_space<vmem>>, vector<32x32xbf16>
    %cst_27 = arith.constant dense<0.000000e+00> : vector<16x32xf32>
    %130 = tpu.matmul %128, %129, %cst_27 {dimension_numbers = #tpu.dot_dimension_numbers<[1], [0], [0], [1], [0, 0, 1, 1], [], []>} : vector<16x32xbf16>, vector<32x32xbf16>, vector<16x32xf32> -> vector<16x32xf32>
    %c0_28 = arith.constant 0 : index
    %c0_29 = arith.constant 0 : index
    %131 = vector.load %arg7[%c0_28, %c0_29] : memref<1x32xf32, #tpu.memory_space<vmem>>, vector<1x32xf32>
    %132 = vector.broadcast %131 : vector<1x32xf32> to vector<16x32xf32>
    %133 = arith.addf %130, %132 : vector<16x32xf32>
    %134 = vector.extract_strided_slice %5 {offsets = [0, 192], sizes = [16, 32], strides = [1, 1]} : vector<16x288xf32> to vector<16x32xf32>
    %135 = vector.extract_strided_slice %134 {offsets = [0, 0], sizes = [16, 16], strides = [1, 1]} : vector<16x32xf32> to vector<16x16xf32>
    %136 = vector.shape_cast %135 : vector<16x16xf32> to vector<1x16x16xf32>
    %137 = vector.extract_strided_slice %134 {offsets = [0, 16], sizes = [16, 16], strides = [1, 1]} : vector<16x32xf32> to vector<16x16xf32>
    %138 = vector.shape_cast %137 : vector<16x16xf32> to vector<1x16x16xf32>
    %139 = tpu.concatenate %136, %138 in 0 : vector<1x16x16xf32>, vector<1x16x16xf32> -> vector<2x16x16xf32>
    %140 = arith.truncf %139 : vector<2x16x16xf32> to vector<2x16x16xbf16>
    %141 = vector.extract_strided_slice %5 {offsets = [0, 224], sizes = [16, 32], strides = [1, 1]} : vector<16x288xf32> to vector<16x32xf32>
    %142 = vector.extract_strided_slice %141 {offsets = [0, 0], sizes = [16, 16], strides = [1, 1]} : vector<16x32xf32> to vector<16x16xf32>
    %143 = vector.shape_cast %142 : vector<16x16xf32> to vector<1x16x16xf32>
    %144 = vector.extract_strided_slice %141 {offsets = [0, 16], sizes = [16, 16], strides = [1, 1]} : vector<16x32xf32> to vector<16x16xf32>
    %145 = vector.shape_cast %144 : vector<16x16xf32> to vector<1x16x16xf32>
    %146 = tpu.concatenate %143, %145 in 0 : vector<1x16x16xf32>, vector<1x16x16xf32> -> vector<2x16x16xf32>
    %147 = arith.truncf %146 : vector<2x16x16xf32> to vector<2x16x16xbf16>
    %148 = vector.extract_strided_slice %5 {offsets = [0, 256], sizes = [16, 32], strides = [1, 1]} : vector<16x288xf32> to vector<16x32xf32>
    %149 = vector.extract_strided_slice %148 {offsets = [0, 0], sizes = [16, 16], strides = [1, 1]} : vector<16x32xf32> to vector<16x16xf32>
    %150 = vector.shape_cast %149 : vector<16x16xf32> to vector<1x16x16xf32>
    %151 = vector.extract_strided_slice %148 {offsets = [0, 16], sizes = [16, 16], strides = [1, 1]} : vector<16x32xf32> to vector<16x16xf32>
    %152 = vector.shape_cast %151 : vector<16x16xf32> to vector<1x16x16xf32>
    %153 = tpu.concatenate %150, %152 in 0 : vector<1x16x16xf32>, vector<1x16x16xf32> -> vector<2x16x16xf32>
    %154 = arith.truncf %153 : vector<2x16x16xf32> to vector<2x16x16xbf16>
    "tpu.trace_start"() <{level = 10 : i32, message = "gtd,gud->gtu"}> : () -> ()
    %cst_30 = arith.constant dense<0.000000e+00> : vector<2x16x16xf32>
    %155 = tpu.matmul %140, %147, %cst_30 {dimension_numbers = #tpu.dot_dimension_numbers<[2], [2], [1], [1], [0, 0, 0, 1, 1, 1], [0], [0]>} : vector<2x16x16xbf16>, vector<2x16x16xbf16>, vector<2x16x16xf32> -> vector<2x16x16xf32>
    "tpu.trace_stop"() : () -> ()
    %cst_31 = arith.constant dense<0xFF800000> : vector<2x16xf32>
    %156 = vector.multi_reduction <maximumf>, %155, %cst_31 [2] : vector<2x16x16xf32> to vector<2x16xf32>
    %157 = vector.shape_cast %156 : vector<2x16xf32> to vector<2x16x1xf32>
    %158 = vector.broadcast %157 : vector<2x16x1xf32> to vector<2x16x16xf32>
    %159 = arith.subf %155, %158 : vector<2x16x16xf32>
    %160 = math.exp %159 : vector<2x16x16xf32>
    %cst_32 = arith.constant dense<0.000000e+00> : vector<2x16xf32>
    %161 = vector.multi_reduction <add>, %160, %cst_32 [2] : vector<2x16x16xf32> to vector<2x16xf32>
    %162 = vector.shape_cast %161 : vector<2x16xf32> to vector<2x16x1xf32>
    %163 = arith.truncf %160 : vector<2x16x16xf32> to vector<2x16x16xbf16>
    "tpu.trace_start"() <{level = 10 : i32, message = "gtu,gud->gtd"}> : () -> ()
    %cst_33 = arith.constant dense<0.000000e+00> : vector<2x16x16xf32>
    %164 = tpu.matmul %163, %154, %cst_33 {dimension_numbers = #tpu.dot_dimension_numbers<[2], [1], [1], [2], [0, 0, 0, 1, 1, 2], [0], [0]>} : vector<2x16x16xbf16>, vector<2x16x16xbf16>, vector<2x16x16xf32> -> vector<2x16x16xf32>
    "tpu.trace_stop"() : () -> ()
    %165 = tpu.reciprocal %162 {approx = true} : vector<2x16x1xf32> -> vector<2x16x1xf32>
    %166 = vector.broadcast %165 : vector<2x16x1xf32> to vector<2x16x16xf32>
    %167 = arith.mulf %164, %166 : vector<2x16x16xf32>
    %168 = vector.extract_strided_slice %167 {offsets = [0, 0, 0], sizes = [1, 16, 16], strides = [1, 1, 1]} : vector<2x16x16xf32> to vector<1x16x16xf32>
    %169 = vector.shape_cast %168 : vector<1x16x16xf32> to vector<16x16xf32>
    %170 = vector.extract_strided_slice %167 {offsets = [1, 0, 0], sizes = [1, 16, 16], strides = [1, 1, 1]} : vector<2x16x16xf32> to vector<1x16x16xf32>
    %171 = vector.shape_cast %170 : vector<1x16x16xf32> to vector<16x16xf32>
    %172 = tpu.concatenate %169, %171 in 1 : vector<16x16xf32>, vector<16x16xf32> -> vector<16x32xf32>
    %c8_i32_34 = arith.constant 8 : i32
    %173 = vector.broadcast %c8_i32_34 : i32 to vector<16x32xi32>
    %174 = arith.cmpi sge, %23, %173 : vector<16x32xi32>
    %cst_35 = arith.constant 5.000000e-01 : f32
    %175 = vector.broadcast %cst_35 : f32 to vector<16x32xf32>
    %176 = arith.mulf %175, %172 : vector<16x32xf32>
    %cst_36 = arith.constant 5.000000e-01 : f32
    %177 = vector.broadcast %cst_36 : f32 to vector<16x32xf32>
    %178 = arith.mulf %177, %133 : vector<16x32xf32>
    %179 = arith.addf %176, %178 : vector<16x32xf32>
    %180 = arith.select %174, %179, %172 : vector<16x32xi1>, vector<16x32xf32>
    %181 = arith.truncf %180 : vector<16x32xf32> to vector<16x32xbf16>
    %c0_37 = arith.constant 0 : index
    %c0_38 = arith.constant 0 : index
    %182 = vector.load %arg5[%c0_37, %c0_38] : memref<32x32xbf16, #tpu.memory_space<vmem>>, vector<32x32xbf16>
    %cst_39 = arith.constant dense<0.000000e+00> : vector<16x32xf32>
    %183 = tpu.matmul %181, %182, %cst_39 {dimension_numbers = #tpu.dot_dimension_numbers<[1], [0], [0], [1], [0, 0, 1, 1], [], []>} : vector<16x32xbf16>, vector<32x32xbf16>, vector<16x32xf32> -> vector<16x32xf32>
    %c0_40 = arith.constant 0 : index
    %c0_41 = arith.constant 0 : index
    %184 = vector.load %arg8[%c0_40, %c0_41] : memref<1x32xf32, #tpu.memory_space<vmem>>, vector<1x32xf32>
    %185 = vector.broadcast %184 : vector<1x32xf32> to vector<16x32xf32>
    %186 = arith.addf %183, %185 : vector<16x32xf32>
    %187 = arith.truncf %186 : vector<16x32xf32> to vector<16x32xbf16>
    %c0_42 = arith.constant 0 : index
    %c0_43 = arith.constant 0 : index
    %188 = vector.load %arg9[%c0_42, %c0_43] : memref<16x32xbf16, #tpu.memory_space<vmem>>, vector<16x32xbf16>
    tpu.vector_store %arg9[%c0_42, %c0_43], %187 {strides = array<i32>} : memref<16x32xbf16, #tpu.memory_space<vmem>>, vector<16x32xbf16>,
    return
  }
  func.func @transform_0(%arg0: i32) -> (i32, i32, i32) {
    %c0_i32 = arith.constant 0 : i32
    %c0_i32_0 = arith.constant 0 : i32
    %c0_i32_1 = arith.constant 0 : i32
    return %arg0, %c0_i32, %c0_i32_0 : i32, i32, i32
  }
  func.func @transform_1(%arg0: i32) -> (i32, i32) {
    %c0_i32 = arith.constant 0 : i32
    %c0_i32_0 = arith.constant 0 : i32
    %c0_i32_1 = arith.constant 0 : i32
    return %c0_i32, %c0_i32_0 : i32, i32
  }
  func.func @transform_2(%arg0: i32) -> (i32, i32) {
    %c0_i32 = arith.constant 0 : i32
    %c0_i32_0 = arith.constant 0 : i32
    %c0_i32_1 = arith.constant 0 : i32
    return %c0_i32, %c0_i32_0 : i32, i32
  }
  func.func @transform_3(%arg0: i32) -> (i32, i32) {
    %c0_i32 = arith.constant 0 : i32
    %c0_i32_0 = arith.constant 0 : i32
    %c0_i32_1 = arith.constant 0 : i32
    return %c0_i32, %c0_i32_0 : i32, i32
  }
  func.func @transform_4(%arg0: i32) -> (i32, i32) {
    %c0_i32 = arith.constant 0 : i32
    %c0_i32_0 = arith.constant 0 : i32
    %c0_i32_1 = arith.constant 0 : i32
    return %c0_i32, %c0_i32_0 : i32, i32
  }
  func.func @transform_5(%arg0: i32) -> (i32, i32) {
    %c0_i32 = arith.constant 0 : i32
    %c0_i32_0 = arith.constant 0 : i32
    %c0_i32_1 = arith.constant 0 : i32
    return %c0_i32, %c0_i32_0 : i32, i32
  }
  func.func @transform_6(%arg0: i32) -> (i32, i32) {
    %c0_i32 = arith.constant 0 : i32
    %c0_i32_0 = arith.constant 0 : i32
    %c0_i32_1 = arith.constant 0 : i32
    return %c0_i32, %c0_i32_0 : i32, i32
  }
  func.func @transform_7(%arg0: i32) -> (i32, i32) {
    %c0_i32 = arith.constant 0 : i32
    %c0_i32_0 = arith.constant 0 : i32
    %c0_i32_1 = arith.constant 0 : i32
    return %c0_i32, %c0_i32_0 : i32, i32
  }
  func.func @transform_8(%arg0: i32) -> (i32, i32) {
    %c0_i32 = arith.constant 0 : i32
    %c0_i32_0 = arith.constant 0 : i32
    return %arg0, %c0_i32 : i32, i32
  }
}

</mosaic_0001>

<bundles_post_ra>
// kernel: tpu_custom_call.1
= control target key start
LH: loop header
LB: loop body
LE: loop exit
PB: predicated region body
PF: predicated region fallthrough
CT: control target
= control target key end

     0   :  { %s1931_s27 = smov 0   ;;  %s2189_s0 = inlined_call_operand.vmem [shape: f32[4,32,16], index: 0, kind: input, shape index: {}]   ;;  %s2190_s1 = inlined_call_operand.vmem [shape: bf16[32,288], index: 1, kind: input, shape index: {}]   ;;  %s2191_s2 = inlined_call_operand.vmem [shape: bf16[32,32], index: 2, kind: input, shape index: {}]   ;;  %s2192_s3 = inlined_call_operand.vmem [shape: bf16[32,32], index: 3, kind: input, shape index: {}]   ;;  %s2193_s4 = inlined_call_operand.vmem [shape: bf16[32,32], index: 4, kind: input, shape index: {}]   ;;  %s2194_s5 = inlined_call_operand.vmem [shape: f32[1,32], index: 5, kind: input, shape index: {}]   ;;  %s2195_s6 = inlined_call_operand.vmem [shape: f32[1,32], index: 6, kind: input, shape index: {}]   ;;  %s2196_s7 = inlined_call_operand.vmem [shape: f32[1,32], index: 7, kind: input, shape index: {}]   ;;  %s2197_s8 = inlined_call_operand.vmem [shape: bf16[64,32], index: 8, kind: output, shape index: {}]  }
   0x1 LB: > { %s1937_s28 = sadd.s32 4294967295, %s1876_s27   ;;  %p1588_p0 = scmp.ge.s32.totalorder %s1876_s27, 1  ;;  %s1876_s27 = sphi %s1931_s27, %s18_s27  }
   0x2   : > { %p262_p1 = scmp.lt.s32.totalorder %s1876_s27, 5 }
   0x4   : > { %p263_p2 = pnand %p1588_p0, %p262_p1 }
   0x5   : > { %p296_p3 = scmp.lt.s32.totalorder (!%p263_p2), %s1937_s28, 3  ;;  %s1881_s24 = smov (!%p263_p2), 112  }
   0x6   : > { %266 = sbr.rel (%p263_p2) target bundleno = 2843 (0xb1b), region = 52  ;;  %s1882_s25 = smov (!%p263_p2), 96  }
   0x7   : > { %s1883_s26 = smov (!%p263_p2), 64   ;;  %s1884_s29 = smov (!%p263_p2), 32  }
   0x8   : > { %s1885_s12 = smov (!%p263_p2), 16  }
   0xb   : > { %v1808_v0 = vld [vmem:[%s2190_s1 + $0x1c] ss:$12 sps:$4 sm:$0xff]   ;;  %v1878_v1 = vmov 0.0   ;;  %v1810_v2 = vld [vmem:[%s2190_s1 + $0x18] ss:$12 sps:$4 sm:$0xff]   ;;  %s297_s11 = scalar_select %p296_p3, %s1937_s28, 3  ;;  %v473_v34 = vlaneseq }
   0xc   : > { %1668 = vmatprep.subr.bf16.mxu1 %v1878_v1  ;;  %401 = vmatprep.subr.bf16.mxu0 %v1808_v0  ;;  %v1811_v3 = vld [vmem:[%s2190_s1 + $0x20] ss:$12 sps:$4 sm:$0xff]   ;;  %v1812_v4 = vld [vmem:[%s2190_s1 + $0x4] ss:$12 sps:$4 sm:$0xff]   ;;  %v1815_v6 = vld [vmem:[%s2190_s1 + $0x8] ss:$12 sps:$4 sm:$0xff]  }
   0xd   : > { %402 = vmatpush1.bf16.msra.mxu0 %v1810_v2  ;;  %v1814_v5 = vld [vmem:[%s2190_s1] ss:$12 sps:$4 sm:$0xff]   ;;  %s1629_s18 = sshll.u32 %s297_s11, 5  ;;  %1669 = vmatpush3.bf16.msra.mxu1 %v1811_v3  ;;  %v1879_v9 = vmov 0   ;;  %vm1880_vm0 = vmmov 0   ;;  %vm385_vm1 = vcmask 261120  }
   0xe   : > { %s300_s23 = scalar_lea.vmem %s2189_s0, %s1629_s18  ;;  %403 = vmatprep.subr.bf16.mxu0 %v1812_v4  ;;  %1670 = vmatprep.subr.bf16.mxu1 %v1878_v1  ;;  %vm515_vm2 = vcmask 130048   ;;  %v2008_v35 = vand.u32 127, %v473_v34  ;;  %vm1525_vm6 = vcmask 257024  }
   0xf   : > { %v308_v7 = vld [vmem:[%s300_s23] sm:$0xff]  ;;  %v309_v8 = vld [vmem:[%s300_s23 + $0x8] sm:$0xff]  ;;  %421 = vmatprep.mubr.bf16.mxu0 %v1879_v9  ;;  %1672 = vmatprep.mubr.msk.bf16.mxu1 %vm1880_vm0, %v1878_v1  ;;  %v310_v10 = vld [vmem:[%s300_s23 + $0x10] sm:$0xff] }
  0x10   : > { %312 = vxpose.xlu0.b32.start [1/4] (short) (narrow) %v308_v7, 16  ;;  %v311_v11 = vld [vmem:[%s300_s23 + $0x18] sm:$0xff]  ;;  %vm613_vm3 = vcmp.ge.s32.totalorder %v2008_v35, 12  ;;  %vm946_vm4 = vcmp.ge.s32.totalorder %v2008_v35, 8 }
  0x11   : > { %404 = vmatpush1.bf16.msra.mxu0 %v1814_v5  ;;  %1671 = vmatpush3.bf16.msra.mxu1 %v1815_v6 }
  0x12   : > { %1676 = vmatprep.subr.bf16.mxu0 %v1878_v1  ;;  %1682 = vmatprep.subr.bf16.mxu1 %v1878_v1 }
  0x14   : > { %313 = vxpose.xlu0.b32.cont [2/4] (short) (narrow) %v309_v8, 16 }
  0x18   : > { %314 = vxpose.xlu0.b32.cont [3/4] (short) (narrow) %v310_v10, 16 }
  0x1c   : > { %315 = vxpose.xlu0.b32.end [4/4] (short) (narrow) %v311_v11, 16 }
  0x8c   : > { %v328_v12 = vpop.trf.xlu0 }
  0x90   : > { %v329_v13 = vpop.trf.xlu0 }
  0x91   : > { %v344_v14 = vpack.c.bf16 %v329_v13, %v328_v12 }
  0x93   : > { %1599 = vmatmul.mubr.msk.bf16.vlgmr.msra.gmra.mxu0 %vm385_vm1, %v344_v14  ;;  %1673 = vmatmul.mubr.msk.bf16.vlgmr.msra.gmra.mxu1 %vm385_vm1, %v344_v14 }
  0x94   : > { %1684 = vmatprep.mubr.msk.bf16.mxu1 %vm1880_vm0, %v1878_v1  ;;  %1678 = vmatprep.mubr.msk.bf16.mxu0 %vm1880_vm0, %v1878_v1 }
 0x153   : > { %v423_v15 = vpop.f32.mrf.mxu0  ;;  %v1976_v16 = vpop.f32.mrf.mxu1 }
 0x155   : > { %v1978_v17 = vpop.f32.mrf.mxu0  ;;  %v1674_v18 = vpop.f32.mrf.mxu1 }
 0x156   : > { %v1816_v18 = vld [vmem:[%s2191_s2 + $0x8] sm:$0xff]  }
 0x157   : > { %v427_v19 = vpop.f32.mrf.mxu0  ;;  %v1980_v20 = vpop.f32.mrf.mxu1 }
 0x158   : > { %v1982_v21 = vpack.c.bf16 %v427_v19, %v423_v15  ;;  %v1803_v22 = vpack.i.bf16 %v1980_v20, %v1976_v16  ;;  %v1191_v23 = vpack.c.bf16 %v1980_v20, %v1976_v16  ;;  %v1788_v24 = vpack.i.bf16 %v427_v19, %v423_v15 }
 0x159   : > { %v1675_v25 = vpop.f32.mrf.mxu1  ;;  %v2013_v38 = vpop.f32.mrf.mxu0 }
 0x15a   : > { %1789 = vrot.lane.b32.xlu1 %v1788_v24, %s1881_s24  ;;  %v2034_v6 = vpack.c.bf16 %v2013_v38, %v1978_v17  ;;  %v1817_v25 = vld [vmem:[%s2191_s2] sm:$0xff]  }
 0x15c   : > { %v854_v10 = vsel %vm515_vm2, %v2034_v6, 0 }
 0x1cc   : > { %v1790_v26 = vpop.permute.xlu1 %1789 }
 0x1cd   : > { %v1792_v27 = vunpack.i.h.bf16 %v1790_v26  ;;  %v1791_v28 = vunpack.i.l.bf16 %v1790_v26 }
 0x1cf   : > { %v1989_v29 = vpack.c.bf16 %v1792_v27, %v1791_v28 }
 0x1d1   : > { %564 = vrot.lane.b32.xlu1 %v1989_v29, %s1882_s25 }
 0x1d5   : > { %513 = vrot.lane.b32.xlu1 %v1982_v21, %s1882_s25 }
 0x243   : > { %v565_v30 = vpop.permute.xlu1 %564 }
 0x244   : > { %v570_v31 = vsel %vm515_vm2, %v565_v30, 0 }
 0x245   : > { %1683 = vmatpush3.bf16.xpose.msra.mxu1 %v570_v31 }
 0x246   : > { %1694 = vmatprep.subr.bf16.mxu1 %v1878_v1 }
 0x247   : > { %v514_v32 = vpop.permute.xlu1 %513 }
 0x248   : > { %v520_v33 = vsel %vm515_vm2, %v514_v32, 0 }
 0x249   : > { %1677 = vmatpush3.bf16.xpose.msra.mxu0 %v520_v33 }
 0x24a   : > { %1688 = vmatprep.subr.bf16.mxu0 %v1878_v1 }
 0x24c   : > { %1685 = vmatmul.mubr.msk.bf16.vlgmr.msra.gmra.mxu1 %vm515_vm2, %v1989_v29 }
 0x24d   : > { %1696 = vmatprep.mubr.msk.bf16.mxu1 %vm1880_vm0, %v1878_v1 }
 0x250   : > { %1679 = vmatmul.mubr.msk.bf16.vlgmr.msra.gmra.mxu0 %vm515_vm2, %v1982_v21 }
 0x251   : > { %1690 = vmatprep.mubr.msk.bf16.mxu0 %vm1880_vm0, %v1878_v1 }
 0x30c   : > { %v606_v36 = vpop.f32.mrf.mxu1 }
 0x30d   : > { %v618_v37 = vsel %vm613_vm3, %v606_v36, -1e+30 }
 0x30e   : > { %v1686_v39 = vpop.f32.mrf.mxu1  ;;  %v626_v40 = vsel %vm515_vm2, %v618_v37, -inf }
 0x30f   : > { %627 = vmax.xlane.f32.xlu1 %v626_v40  ;;  %v1798_v40 = vpack.i.bf16 %v2013_v38, %v1978_v17 }
 0x310   : > { %v556_v41 = vpop.f32.mrf.mxu0  ;;  %v609_v42 = vpop.f32.mrf.mxu1 }
 0x311   : > { %v619_v43 = vsel %vm613_vm3, %v609_v42, -1e+30  ;;  %v616_v47 = vsel %vm613_vm3, %v556_v41, -1e+30 }
 0x312   : > { %v1680_v44 = vpop.f32.mrf.mxu0  ;;  %v1687_v45 = vpop.f32.mrf.mxu1  ;;  %v629_v46 = vsel %vm515_vm2, %v619_v43, -inf  ;;  %v620_v50 = vsel %vm515_vm2, %v616_v47, -inf }
 0x313   : > { %630 = vmax.xlane.f32.xlu0 %v629_v46 }
 0x314   : > { %v559_v48 = vpop.f32.mrf.mxu0 }
 0x315   : > { %v617_v51 = vsel %vm613_vm3, %v559_v48, -1e+30 }
 0x316   : > { %v1681_v49 = vpop.f32.mrf.mxu0  ;;  %v623_v52 = vsel %vm515_vm2, %v617_v51, -inf }
 0x317   : > { %621 = vmax.xlane.f32.xlu0 %v620_v50 }
 0x31b   : > { %624 = vmax.xlane.f32.xlu0 %v623_v52 }
 0x320   : > { %705 = vrot.lane.b32.xlu1 %v1989_v29, %s1883_s26 }
 0x324   : > { %658 = vrot.lane.b32.xlu1 %v1982_v21, %s1883_s26 }
 0x398   : > { %v628_v53 = vpop.xlane.xlu1 %627 }
 0x399   : > { %v634_v54 = vsub.f32 %v618_v37, %v628_v53 }
 0x39b   : > { %v640_v55 = vmul.f32 1.442695, %v634_v54 }
 0x39c   : > { %v631_v56 = vpop.xlane.xlu0 %630  ;;  %v706_v57 = vpop.permute.xlu1 %705 }
 0x39d   : > { %1822 = vpow2.f32 %v640_v55  ;;  %v635_v58 = vsub.f32 %v619_v43, %v631_v56  ;;  %1695 = vmatpush3.bf16.msra.mxu1 %v706_v57 }
 0x39e   : > { %1708 = vmatprep.subr.bf16.mxu1 %v1878_v1 }
 0x39f   : > { %v642_v59 = vmul.f32 1.442695, %v635_v58 }
 0x3a0   : > { %v659_v60 = vpop.permute.xlu1 %658  ;;  %v622_v61 = vpop.xlane.xlu0 %621 }
 0x3a1   : > { %1824 = vpow2.f32 %v642_v59  ;;  %v632_v62 = vsub.f32 %v616_v47, %v622_v61  ;;  %1689 = vmatpush3.bf16.msra.mxu0 %v659_v60 }
 0x3a2   : > { %1700 = vmatprep.subr.bf16.mxu0 %v1878_v1 }
 0x3a3   : > { %v636_v63 = vmul.f32 1.442695, %v632_v62 }
 0x3a4   : > { %v625_v0 = vpop.xlane.xlu0 %624 }
 0x3a5   : > { %1826 = vpow2.f32 %v636_v63  ;;  %v633_v2 = vsub.f32 %v617_v51, %v625_v0 }
 0x3a7   : > { %v638_v3 = vmul.f32 1.442695, %v633_v2 }
 0x3a9   : > { %1828 = vpow2.f32 %v638_v3 }
 0x3aa   : > { %v1823_v4 = vpop.eup %1822 }
 0x3ab   : > { %v650_v5 = vsel %vm515_vm2, %v1823_v4, 0.0 }
 0x3ac   : > { %651 = vadd.xlane.f32.xlu0 %v650_v5 }
 0x3ae   : > { %v1825_v7 = vpop.eup %1824 }
 0x3af   : > { %v653_v8 = vsel %vm515_vm2, %v1825_v7, 0.0  ;;  %v657_v9 = vpack.c.bf16 %v1825_v7, %v1823_v4 }
 0x3b0   : > { %654 = vadd.xlane.f32.xlu1 %v653_v8 }
 0x3b1   : > { %1697 = vmatmul.mubr.msk.bf16.vlgmr.msra.gmra.mxu1 %vm515_vm2, %v657_v9 }
 0x3b2   : > { %v1827_v11 = vpop.eup %1826  ;;  %1709 = vmatpush3.bf16.xpose.msra.mxu1 %v854_v10  ;;  %1710 = vmatprep.mubr.msk.bf16.mxu1 %vm1880_vm0, %v1878_v1 }
 0x3b3   : > { %v644_v12 = vsel %vm515_vm2, %v1827_v11, 0.0  ;;  %1720 = vmatprep.subr.bf16.mxu1 %v1878_v1 }
 0x3b4   : > { %645 = vadd.xlane.f32.xlu0 %v644_v12 }
 0x3b6   : > { %v1829_v13 = vpop.eup %1828 }
 0x3b7   : > { %v647_v14 = vsel %vm515_vm2, %v1829_v13, 0.0  ;;  %v656_v15 = vpack.c.bf16 %v1829_v13, %v1827_v11 }
 0x3b8   : > { %648 = vadd.xlane.f32.xlu0 %v647_v14 }
 0x3b9   : > { %1691 = vmatmul.mubr.msk.bf16.vlgmr.msra.gmra.mxu0 %vm515_vm2, %v656_v15 }
 0x3ba   : > { %1704 = vmatprep.mubr.msk.bf16.mxu0 %vm1880_vm0, %v1878_v1  ;;  %1701 = vmatpush3.bf16.msra.mxu0 %v1816_v18 }
 0x3bb   : > { %1702 = vmatprep.subr.bf16.mxu0 %v1878_v1 }
 0x3be   : > { %1703 = vmatpush3.bf16.msra.mxu0 %v1817_v25 }
 0x3bf   : > { %1714 = vmatprep.subr.bf16.mxu0 %v1878_v1 }
 0x3c1   : > { %897 = vrot.lane.b32.xlu1 %v1989_v29, %s1884_s29 }
 0x435   : > { %v652_v19 = vpop.xlane.xlu0 %651 }
 0x436   : > { %1830 = vrcp.f32 %v652_v19 }
 0x439   : > { %v655_v24 = vpop.xlane.xlu1 %654 }
 0x43a   : > { %1832 = vrcp.f32 %v655_v24 }
 0x43d   : > { %v646_v43 = vpop.xlane.xlu0 %645  ;;  %v898_v58 = vpop.permute.xlu1 %897 }
 0x43e   : > { %1834 = vrcp.f32 %v646_v43 }
 0x441   : > { %v649_v44 = vpop.xlane.xlu0 %648 }
 0x442   : > { %1836 = vrcp.f32 %v649_v44 }
 0x443   : > { %v1831_v28 = vpop.eup %1830 }
 0x447   : > { %v1833_v29 = vpop.eup %1832 }
 0x44b   : > { %v1835_v45 = vpop.eup %1834 }
 0x44f   : > { %v1837_v46 = vpop.eup %1836 }
 0x471   : > { %v745_v26 = vpop.f32.mrf.mxu1 }
 0x472   : > { %v758_v31 = vmul.f32 %v1831_v28, %v745_v26 }
 0x473   : > { %v1698_v27 = vpop.f32.mrf.mxu1 }
 0x475   : > { %v748_v30 = vpop.f32.mrf.mxu1 }
 0x476   : > { %v759_v32 = vmul.f32 %v1833_v29, %v748_v30 }
 0x477   : > { %v1699_v33 = vpop.f32.mrf.mxu1 }
 0x478   : > { %v1793_v36 = vpack.i.bf16 %v759_v32, %v758_v31 }
 0x479   : > { %v698_v37 = vpop.f32.mrf.mxu0 }
 0x47a   : > { %1794 = vrot.lane.b32.xlu0 %v1793_v36, %s1885_s12  ;;  %v756_v48 = vmul.f32 %v1835_v45, %v698_v37 }
 0x47b   : > { %v1692_v39 = vpop.f32.mrf.mxu0 }
 0x47d   : > { %v701_v41 = vpop.f32.mrf.mxu0 }
 0x47e   : > { %1799 = vrot.lane.b32.xlu0 %v1798_v40, %s1881_s24  ;;  %v757_v49 = vmul.f32 %v1837_v46, %v701_v41 }
 0x47f   : > { %v1693_v42 = vpop.f32.mrf.mxu0 }
 0x482   : > { %848 = vrot.lane.b32.xlu0 %v1982_v21, %s1884_s29 }
 0x4ec   : > { %v1795_v47 = vpop.permute.xlu0 %1794 }
 0x4ed   : > { %v1797_v50 = vunpack.i.h.bf16 %v1795_v47  ;;  %v1796_v51 = vunpack.i.l.bf16 %v1795_v47 }
 0x4ef   : > { %v768_v17 = vsel %vm515_vm2, %v756_v48, %v1796_v51  ;;  %v769_v38 = vsel %vm515_vm2, %v757_v49, %v1797_v50  ;;  %v1818_v51 = vld [vmem:[%s2192_s3 + $0x8] sm:$0xff]  }
 0x4f0   : > { %v770_v52 = vpack.c.bf16 %v769_v38, %v768_v17  ;;  %v1800_v53 = vpop.permute.xlu0 %1799  ;;  %v1819_v17 = vld [vmem:[%s2192_s3] sm:$0xff]  }
 0x4f1   : > { %v1802_v54 = vunpack.i.h.bf16 %v1800_v53  ;;  %v1801_v55 = vunpack.i.l.bf16 %v1800_v53 }
 0x4f2   : > { %1705 = vmatmul.mubr.msk.bf16.vlgmr.msra.gmra.mxu0 %vm385_vm1, %v770_v52 }
 0x4f3   : > { %v2067_v21 = vpack.c.bf16 %v1802_v54, %v1801_v55  ;;  %1716 = vmatprep.mubr.msk.bf16.mxu0 %vm1880_vm0, %v1878_v1 }
 0x4f4   : > { %v849_v56 = vpop.permute.xlu0 %848 }
 0x4f5   : > { %1711 = vmatmul.mubr.msk.bf16.vlgmr.msra.gmra.mxu1 %vm515_vm2, %v849_v56  ;;  %v903_v57 = vsel %vm515_vm2, %v2067_v21, 0 }
 0x4f6   : > { %1715 = vmatpush3.bf16.xpose.msra.mxu0 %v903_v57  ;;  %1722 = vmatprep.mubr.msk.bf16.mxu1 %vm1880_vm0, %v1878_v1 }
 0x4f7   : > { %1726 = vmatprep.subr.bf16.mxu0 %v1878_v1 }
 0x4fd   : > { %1717 = vmatmul.mubr.msk.bf16.vlgmr.msra.gmra.mxu0 %vm515_vm2, %v898_v58 }
 0x4fe   : > { %1728 = vmatprep.mubr.msk.bf16.mxu0 %vm1880_vm0, %v1878_v1 }
 0x5b2   : > { %v831_v59 = vpop.f32.mrf.mxu0 }
 0x5b4   : > { %v1706_v60 = vpop.f32.mrf.mxu0 }
 0x5b5   : > { %v890_v61 = vpop.f32.mrf.mxu1 }
 0x5b6   : > { %v2080_v62 = vpop.f32.mrf.mxu0  ;;  %v949_v13 = vsel %vm946_vm4, %v890_v61, -1e+30 }
 0x5b7   : > { %v1712_v63 = vpop.f32.mrf.mxu1  ;;  %v953_v14 = vsel %vm515_vm2, %v949_v13, -inf }
 0x5b8   : > { %v1707_v0 = vpop.f32.mrf.mxu0 }
 0x5b9   : > { %v893_v2 = vpop.f32.mrf.mxu1 }
 0x5ba   : > { %v950_v15 = vsel %vm946_vm4, %v893_v2, -1e+30 }
 0x5bb   : > { %v1713_v3 = vpop.f32.mrf.mxu1  ;;  %v956_v18 = vsel %vm515_vm2, %v950_v15, -inf }
 0x5bc   : > { %v476_v3 = vshrl.u32 %v473_v34, 7 }
 0x5bd   : > { %v939_v4 = vpop.f32.mrf.mxu0 }
 0x5be   : > { %v951_v5 = vsel %vm946_vm4, %v939_v4, -1e+30  ;;  %v1605_v4 = vld [vmem:[%s2194_s5] ss:$0 sm:$0xff] }
 0x5bf   : > { %v1718_v7 = vpop.f32.mrf.mxu0  ;;  %v959_v8 = vsel %vm515_vm2, %v951_v5, -inf }
 0x5c0   : > { %960 = vmax.xlane.f32.xlu0 %v959_v8 }
 0x5c1   : > { %v942_v9 = vpop.f32.mrf.mxu0 }
 0x5c2   : > { %v952_v10 = vsel %vm946_vm4, %v942_v9, -1e+30 }
 0x5c3   : > { %v1719_v11 = vpop.f32.mrf.mxu0  ;;  %v962_v12 = vsel %vm515_vm2, %v952_v10, -inf }
 0x5c4   : > { %963 = vmax.xlane.f32.xlu1 %v962_v12 }
 0x5c8   : > { %954 = vmax.xlane.f32.xlu1 %v953_v14 }
 0x5cc   : > { %957 = vmax.xlane.f32.xlu1 %v956_v18 }
 0x5d6   : > { %1040 = vrot.lane.b32.xlu0 %v2067_v21, %s1882_s25 }
 0x5da   : > { %992 = vrot.lane.b32.xlu0 %v2034_v6, %s1882_s25  ;;  %s1591_s25 = sshll.u32 %s1937_s28, 1 }
 0x5db   : > { %p302_p4 = scmp.lt.s32.totalorder %s1591_s25, 7 }
 0x5dd   : > { %s2199_s25 = smov (!%p302_p4, %s1591_s25), 7 }
 0x5de   : > { %s1592_s30 = sshll.u32 %s2199_s25, 2 }
 0x5df   : > { %s305_s11 = scalar_lea.vmem %s2197_s8, %s1592_s30 }
 0x649   : > { %v961_v35 = vpop.xlane.xlu0 %960 }
 0x64a   : > { %v967_v19 = vsub.f32 %v951_v5, %v961_v35  ;;  %v477_v5 = vadd.s32 8, %v476_v3 }
 0x64c   : > { %v973_v24 = vmul.f32 1.442695, %v967_v19  ;;  %v489_v9 = vand.u32 15, %v477_v5 }
 0x64d   : > { %v1041_v25 = vpop.permute.xlu0 %1040  ;;  %v964_v26 = vpop.xlane.xlu1 %963 }
 0x64e   : > { %1838 = vpow2.f32 %v973_v24  ;;  %v968_v27 = vsub.f32 %v952_v10, %v964_v26  ;;  %1727 = vmatpush3.bf16.msra.mxu0 %v1041_v25  ;;  %vm1106_vm5 = vcmp.ge.s32.totalorder %v489_v9, 12  ;;  %v1821_v9 = vld [vmem:[%s2193_s4] sm:$0xff]  }
 0x64f   : > { %1740 = vmatprep.subr.bf16.mxu0 %v1878_v1 }
 0x650   : > { %v975_v28 = vmul.f32 1.442695, %v968_v27 }
 0x651   : > { %v993_v29 = vpop.permute.xlu0 %992  ;;  %v955_v30 = vpop.xlane.xlu1 %954 }
 0x652   : > { %1840 = vpow2.f32 %v975_v28  ;;  %v965_v31 = vsub.f32 %v949_v13, %v955_v30  ;;  %1721 = vmatpush3.bf16.msra.mxu1 %v993_v29 }
 0x653   : > { %1732 = vmatprep.subr.bf16.mxu1 %v1878_v1 }
 0x654   : > { %v969_v32 = vmul.f32 1.442695, %v965_v31 }
 0x655   : > { %v958_v33 = vpop.xlane.xlu1 %957 }
 0x656   : > { %v966_v36 = vsub.f32 %v950_v15, %v958_v33  ;;  %1842 = vpow2.f32 %v969_v32 }
 0x658   : > { %v971_v37 = vmul.f32 1.442695, %v966_v36 }
 0x65a   : > { %1844 = vpow2.f32 %v971_v37 }
 0x65b   : > { %v1839_v39 = vpop.eup %1838 }
 0x65c   : > { %v983_v40 = vsel %vm515_vm2, %v1839_v39, 0.0 }
 0x65d   : > { %984 = vadd.xlane.f32.xlu0 %v983_v40 }
 0x65f   : > { %v1841_v41 = vpop.eup %1840 }
 0x660   : > { %v986_v42 = vsel %vm515_vm2, %v1841_v41, 0.0  ;;  %v990_v43 = vpack.c.bf16 %v1841_v41, %v1839_v39 }
 0x661   : > { %987 = vadd.xlane.f32.xlu1 %v986_v42 }
 0x662   : > { %1729 = vmatmul.mubr.msk.bf16.vlgmr.msra.gmra.mxu0 %vm515_vm2, %v990_v43 }
 0x663   : > { %1742 = vmatprep.mubr.msk.bf16.mxu0 %vm1880_vm0, %v1878_v1  ;;  %v1843_v44 = vpop.eup %1842 }
 0x664   : > { %v977_v48 = vsel %vm515_vm2, %v1843_v44, 0.0 }
 0x667   : > { %v1845_v45 = vpop.eup %1844 }
 0x668   : > { %v980_v46 = vsel %vm515_vm2, %v1845_v45, 0.0  ;;  %v989_v47 = vpack.c.bf16 %v1845_v45, %v1843_v44 }
 0x669   : > { %981 = vadd.xlane.f32.xlu1 %v980_v46 }
 0x66a   : > { %1723 = vmatmul.mubr.msk.bf16.vlgmr.msra.gmra.mxu1 %vm515_vm2, %v989_v47 }
 0x66b   : > { %1736 = vmatprep.mubr.msk.bf16.mxu1 %vm1880_vm0, %v1878_v1  ;;  %1733 = vmatpush3.bf16.msra.mxu1 %v1818_v51 }
 0x66c   : > { %1734 = vmatprep.subr.bf16.mxu1 %v1878_v1 }
 0x66d   : > { %978 = vadd.xlane.f32.xlu1 %v977_v48 }
 0x66f   : > { %1735 = vmatpush3.bf16.msra.mxu1 %v1819_v17 }
 0x670   : > { %1746 = vmatprep.subr.bf16.mxu1 %v1878_v1 }
 0x673   : > { %1246 = vrot.lane.b32.xlu0 %v2067_v21, %s1884_s29 }
 0x6e6   : > { %v985_v50 = vpop.xlane.xlu0 %984 }
 0x6ea   : > { %v988_v49 = vpop.xlane.xlu1 %987  ;;  %v1247_v35 = vpop.permute.xlu0 %1246 }
 0x6eb   : > { %1846 = vrcp.f32 %v988_v49 }
 0x6ec   : > { %1848 = vrcp.f32 %v985_v50 }
 0x6f2   : > { %v982_v0 = vpop.xlane.xlu1 %981 }
 0x6f3   : > { %1850 = vrcp.f32 %v982_v0 }
 0x6f6   : > { %v979_v2 = vpop.xlane.xlu1 %978 }
 0x6f7   : > { %1852 = vrcp.f32 %v979_v2 }
 0x6f8   : > { %v1847_v53 = vpop.eup %1846 }
 0x6f9   : > { %v1849_v57 = vpop.eup %1848 }
 0x700   : > { %v1851_v7 = vpop.eup %1850 }
 0x722   : > { %v1080_v38 = vpop.f32.mrf.mxu0 }
 0x723   : > { %v1093_v59 = vmul.f32 %v1849_v57, %v1080_v38 }
 0x724   : > { %v1730_v52 = vpop.f32.mrf.mxu0 }
 0x726   : > { %v1083_v54 = vpop.f32.mrf.mxu0 }
 0x727   : > { %v1094_v55 = vmul.f32 %v1847_v53, %v1083_v54 }
 0x728   : > { %v1731_v56 = vpop.f32.mrf.mxu0 }
 0x729   : > { %1099 = vrot.lane.b32.xlu1 %v1094_v55, %s1885_s12 }
 0x72a   : > { %v1032_v58 = vpop.f32.mrf.mxu1 }
 0x72c   : > { %v1724_v60 = vpop.f32.mrf.mxu1 }
 0x72d   : > { %1097 = vrot.lane.b32.xlu1 %v1093_v59, %s1885_s12 }
 0x72e   : > { %v1035_v61 = vpop.f32.mrf.mxu1 }
 0x72f   : > { %v1092_v8 = vmul.f32 %v1851_v7, %v1035_v61 }
 0x730   : > { %v1725_v63 = vpop.f32.mrf.mxu1 }
 0x731   : > { %1244 = vrot.lane.b32.xlu1 %v2067_v21, %s1883_s26  ;;  %v835_v21 = vadd.f32 %v1605_v4, %v2080_v62  ;;  %v1252_v62 = vsel %vm515_vm2, %v1247_v35, 0 }
 0x733   : > { %v1110_v12 = vmul.f32 0.5, %v835_v21 }
 0x735   : > { %1195 = vrot.lane.b32.xlu1 %v2034_v6, %s1884_s29 }
 0x739   : > { %1193 = vrot.lane.b32.xlu1 %v2034_v6, %s1883_s26  ;;  %v1853_v6 = vpop.eup %1852 }
 0x73a   : > { %v1091_v14 = vmul.f32 %v1853_v6, %v1032_v58 }
 0x79b   : > { %v1100_v10 = vpop.permute.xlu1 %1099 }
 0x79c   : > { %v1104_v11 = vsel %vm515_vm2, %v1092_v8, %v1100_v10  ;;  %v1820_v8 = vld [vmem:[%s2193_s4 + $0x8] sm:$0xff]  }
 0x79d   : > { %v1108_v13 = vmul.f32 0.5, %v1104_v11 }
 0x79f   : > { %v1112_v15 = vadd.f32 %v1110_v12, %v1108_v13  ;;  %v1098_v34 = vpop.permute.xlu1 %1097 }
 0x7a0   : > { %v1103_v18 = vsel %vm515_vm2, %v1091_v14, %v1098_v34 }
 0x7a1   : > { %v1114_v19 = vsel %vm1106_vm5, %v1112_v15, %v1104_v11 }
 0x7a2   : > { %v1115_v24 = vpack.c.bf16 %v1114_v19, %v1103_v18 }
 0x7a3   : > { %v1245_v25 = vpop.permute.xlu1 %1244 }
 0x7a4   : > { %1737 = vmatmul.mubr.msk.bf16.vlgmr.msra.gmra.mxu1 %vm385_vm1, %v1115_v24 }
 0x7a5   : > { %1747 = vmatpush3.bf16.xpose.msra.mxu1 %v1252_v62  ;;  %1748 = vmatprep.mubr.msk.bf16.mxu1 %vm1880_vm0, %v1878_v1  ;;  %v1613_v62 = vld [vmem:[%s2195_s6] ss:$0 sm:$0xff] }
 0x7a6   : > { %1758 = vmatprep.subr.bf16.mxu1 %v1878_v1 }
 0x7a7   : > { %v1196_v26 = vpop.permute.xlu1 %1195 }
 0x7a8   : > { %v1201_v27 = vsel %vm515_vm2, %v1196_v26, 0 }
 0x7a9   : > { %1741 = vmatpush3.bf16.xpose.msra.mxu0 %v1201_v27 }
 0x7aa   : > { %1752 = vmatprep.subr.bf16.mxu0 %v1878_v1 }
 0x7ab   : > { %v1194_v28 = vpop.permute.xlu1 %1193 }
 0x7ac   : > { %1749 = vmatmul.mubr.msk.bf16.vlgmr.msra.gmra.mxu1 %vm515_vm2, %v1245_v25 }
 0x7ad   : > { %1760 = vmatprep.mubr.msk.bf16.mxu1 %vm1880_vm0, %v1878_v1 }
 0x7b0   : > { %1743 = vmatmul.mubr.msk.bf16.vlgmr.msra.gmra.mxu0 %vm515_vm2, %v1194_v28 }
 0x7b1   : > { %1753 = vmatpush3.bf16.msra.mxu0 %v1191_v23  ;;  %1754 = vmatprep.mubr.msk.bf16.mxu0 %vm1880_vm0, %v1878_v1 }
 0x7b2   : > { %1764 = vmatprep.subr.bf16.mxu0 %v1878_v1 }
 0x864   : > { %v1176_v29 = vpop.f32.mrf.mxu1 }
 0x866   : > { %v1738_v30 = vpop.f32.mrf.mxu1 }
 0x868   : > { %v2145_v31 = vpop.f32.mrf.mxu1 }
 0x869   : > { %v1180_v27 = vadd.f32 %v1613_v62, %v2145_v31  ;;  %v1621_v31 = vld [vmem:[%s2196_s7] ss:$0 sm:$0xff] }
 0x86a   : > { %v1739_v32 = vpop.f32.mrf.mxu1 }
 0x86c   : > { %v1288_v33 = vpop.f32.mrf.mxu1 }
 0x86d   : > { %v1301_v36 = vsel %vm515_vm2, %v1288_v33, -inf }
 0x86e   : > { %1302 = vmax.xlane.f32.xlu1 %v1301_v36  ;;  %v1750_v37 = vpop.f32.mrf.mxu1 }
 0x870   : > { %v1237_v39 = vpop.f32.mrf.mxu0  ;;  %v1291_v40 = vpop.f32.mrf.mxu1 }
 0x871   : > { %v1304_v41 = vsel %vm515_vm2, %v1291_v40, -inf  ;;  %v1295_v44 = vsel %vm515_vm2, %v1237_v39, -inf }
 0x872   : > { %1305 = vmax.xlane.f32.xlu0 %v1304_v41  ;;  %v1744_v23 = vpop.f32.mrf.mxu0  ;;  %v1751_v42 = vpop.f32.mrf.mxu1 }
 0x874   : > { %v1240_v43 = vpop.f32.mrf.mxu0 }
 0x875   : > { %v1298_v46 = vsel %vm515_vm2, %v1240_v43, -inf }
 0x876   : > { %1296 = vmax.xlane.f32.xlu0 %v1295_v44  ;;  %v1745_v45 = vpop.f32.mrf.mxu0 }
 0x87a   : > { %1299 = vmax.xlane.f32.xlu0 %v1298_v46 }
 0x87f   : > { %1804 = vrot.lane.b32.xlu1 %v1803_v22, %s1881_s24 }
 0x8f7   : > { %v1303_v47 = vpop.xlane.xlu1 %1302 }
 0x8f8   : > { %v1309_v48 = vsub.f32 %v1288_v33, %v1303_v47  ;;  %v1444_v33 = vmul.f32 0.5, %v1180_v27 }
 0x8fa   : > { %v1315_v49 = vmul.f32 1.442695, %v1309_v48 }
 0x8fb   : > { %v1306_v50 = vpop.xlane.xlu0 %1305  ;;  %v1805_v51 = vpop.permute.xlu1 %1804 }
 0x8fc   : > { %v1310_v17 = vsub.f32 %v1291_v40, %v1306_v50  ;;  %v1807_v38 = vunpack.i.h.bf16 %v1805_v51  ;;  %v1806_v52 = vunpack.i.l.bf16 %v1805_v51  ;;  %1854 = vpow2.f32 %v1315_v49 }
 0x8fe   : > { %v1317_v53 = vmul.f32 1.442695, %v1310_v17  ;;  %v1192_v54 = vpack.c.bf16 %v1807_v38, %v1806_v52 }
 0x8ff   : > { %v1297_v55 = vpop.xlane.xlu0 %1296 }
 0x900   : > { %1856 = vpow2.f32 %v1317_v53  ;;  %v1307_v56 = vsub.f32 %v1237_v39, %v1297_v55  ;;  %1759 = vmatpush3.bf16.msra.mxu1 %v1192_v54 }
 0x902   : > { %v1311_v57 = vmul.f32 1.442695, %v1307_v56 }
 0x903   : > { %v1300_v58 = vpop.xlane.xlu0 %1299 }
 0x904   : > { %v1308_v59 = vsub.f32 %v1240_v43, %v1300_v58  ;;  %1858 = vpow2.f32 %v1311_v57 }
 0x906   : > { %v1313_v16 = vmul.f32 1.442695, %v1308_v59 }
 0x908   : > { %1860 = vpow2.f32 %v1313_v16 }
 0x909   : > { %v1855_v20 = vpop.eup %1854 }
 0x90a   : > { %v1325_v63 = vsel %vm515_vm2, %v1855_v20, 0.0 }
 0x90d   : > { %v1857_v22 = vpop.eup %1856 }
 0x90e   : > { %v1328_v60 = vsel %vm515_vm2, %v1857_v22, 0.0  ;;  %v1332_v61 = vpack.c.bf16 %v1857_v22, %v1855_v20 }
 0x90f   : > { %1329 = vadd.xlane.f32.xlu0 %v1328_v60 }
 0x910   : > { %1761 = vmatmul.mubr.msk.bf16.vlgmr.msra.gmra.mxu1 %vm515_vm2, %v1332_v61 }
 0x911   : > { %v1859_v0 = vpop.eup %1858 }
 0x912   : > { %v1319_v3 = vsel %vm515_vm2, %v1859_v0, 0.0 }
 0x913   : > { %1326 = vadd.xlane.f32.xlu0 %v1325_v63 }
 0x915   : > { %v1861_v2 = vpop.eup %1860 }
 0x916   : > { %v1322_v4 = vsel %vm515_vm2, %v1861_v2, 0.0  ;;  %v1331_v5 = vpack.c.bf16 %v1861_v2, %v1859_v0 }
 0x917   : > { %1320 = vadd.xlane.f32.xlu0 %v1319_v3  ;;  %1323 = vadd.xlane.f32.xlu1 %v1322_v4 }
 0x918   : > { %1755 = vmatmul.mubr.msk.bf16.vlgmr.msra.gmra.mxu0 %vm515_vm2, %v1331_v5 }
 0x919   : > { %1768 = vmatprep.mubr.msk.bf16.mxu0 %vm1880_vm0, %v1878_v1  ;;  %1765 = vmatpush3.bf16.msra.mxu0 %v1820_v8 }
 0x91a   : > { %1766 = vmatprep.subr.bf16.mxu0 %v1878_v1 }
 0x91d   : > { %1767 = vmatpush3.bf16.msra.mxu0 %v1821_v9 }
 0x998   : > { %v1330_v7 = vpop.xlane.xlu0 %1329 }
 0x999   : > { %1862 = vrcp.f32 %v1330_v7 }
 0x99c   : > { %v1327_v21 = vpop.xlane.xlu0 %1326 }
 0x99d   : > { %1864 = vrcp.f32 %v1327_v21 }
 0x9a0   : > { %v1324_v24 = vpop.xlane.xlu1 %1323  ;;  %v1321_v25 = vpop.xlane.xlu0 %1320 }
 0x9a1   : > { %1866 = vrcp.f32 %v1324_v24 }
 0x9a2   : > { %1868 = vrcp.f32 %v1321_v25 }
 0x9a6   : > { %v1863_v6 = vpop.eup %1862 }
 0x9aa   : > { %v1865_v15 = vpop.eup %1864 }
 0x9ae   : > { %v1867_v26 = vpop.eup %1866 }
 0x9af   : > { %v1869_v32 = vpop.eup %1868 }
 0x9d0   : > { %v1414_v10 = vpop.f32.mrf.mxu1 }
 0x9d1   : > { %v1427_v18 = vmul.f32 %v1865_v15, %v1414_v10 }
 0x9d2   : > { %v1762_v11 = vpop.f32.mrf.mxu1 }
 0x9d4   : > { %v1417_v12 = vpop.f32.mrf.mxu1 }
 0x9d5   : > { %v1428_v13 = vmul.f32 %v1863_v6, %v1417_v12 }
 0x9d6   : > { %v1763_v14 = vpop.f32.mrf.mxu1 }
 0x9d7   : > { %1433 = vrot.lane.b32.xlu0 %v1428_v13, %s1885_s12 }
 0x9d8   : > { %v1370_v34 = vpop.f32.mrf.mxu0 }
 0x9d9   : > { %v1425_v37 = vmul.f32 %v1869_v32, %v1370_v34 }
 0x9da   : > { %v1756_v35 = vpop.f32.mrf.mxu0 }
 0x9db   : > { %1431 = vrot.lane.b32.xlu0 %v1427_v18, %s1885_s12 }
 0x9dc   : > { %v1373_v1 = vpop.f32.mrf.mxu0 }
 0x9dd   : > { %v1426_v28 = vmul.f32 %v1867_v26, %v1373_v1 }
 0x9de   : > { %v1757_v19 = vpop.f32.mrf.mxu0 }
 0xa49   : > { %v1434_v29 = vpop.permute.xlu0 %1433 }
 0xa4a   : > { %v1438_v30 = vsel %vm515_vm2, %v1426_v28, %v1434_v29 }
 0xa4b   : > { %v1442_v36 = vmul.f32 0.5, %v1438_v30 }
 0xa4d   : > { %v1446_v39 = vadd.f32 %v1444_v33, %v1442_v36  ;;  %v1432_v40 = vpop.permute.xlu0 %1431 }
 0xa4e   : > { %v1437_v41 = vsel %vm515_vm2, %v1425_v37, %v1432_v40 }
 0xa4f   : > { %v1449_v23 = vpack.c.bf16 %v1446_v39, %v1437_v41 }
 0xa51   : > { %1769 = vmatmul.mubr.msk.bf16.vlgmr.msra.gmra.mxu0 %vm385_vm1, %v1449_v23 }
 0xb11   : > { %v1510_v42 = vpop.f32.mrf.mxu0 }
 0xb12   : > { %v1511_v43 = vadd.f32 %v1621_v31, %v1510_v42 }
 0xb13   : > { %v1770_v44 = vpop.f32.mrf.mxu0 }
 0xb14   : > { %v1630_v45 = vpack.c.bf16 %v1511_v43, %v1511_v43 }
 0xb15   : > { %v1513_v46 = vpop.f32.mrf.mxu0 }
 0xb16   : > { %1526 = vst.msk [vmem:[%s305_s11] sm:$0xf] %vm1525_vm6, %v1630_v45  ;;  %v1514_v47 = vadd.f32 %v1621_v31, %v1513_v46 }
 0xb17   : > { %v1771_v48 = vpop.f32.mrf.mxu0 }
 0xb18   : > { %v1631_v49 = vpack.c.bf16 %v1514_v47, %v1514_v47 }
 0xb1a   : > { %1527 = vst.msk [vmem:[%s305_s11 + $0x4] sm:$0xf] %vm1525_vm6, %v1631_v49 }
 0xb1b PF: > { %s18_s27 = sadd.s32 1, %s1876_s27  }
 0xb1c   : > { %p15_p5 = scmp.ge.s32.totalorder %s18_s27, 6  }
 0xb1e   :  { %17 = sbr.rel (!%p15_p5) target bundleno = 1 (0x1), region = 82 }

</bundles_post_ra>
